<compile_context>
chip_gen: v5e
topology: v5e:2x2
jax: 0.10.0
libtpu: 0.0.40
codegen_flags: <defaults>
</compile_context>

<pallas_src>
import functools

import jax
import jax.numpy as jnp
from jax.experimental import pallas as pl
from jax.experimental.pallas import tpu as pltpu

EPS = 1e-6                       # timm ViT LayerNorm eps
TB_MAX = 4                       # sequences per grid step (amortize pipeline overhead)
VMEM_LIMIT = 48 * 1024 * 1024    # > v5e(16MiB)/v6e(32MiB) defaults, < v7x 64MiB physical


def _choose_tb(btn, cap=TB_MAX):
    """Largest divisor of BTN that is <= cap (sequences per grid step)."""
    for t in range(min(cap, btn), 0, -1):
        if btn % t == 0:
            return t
    return 1


def _const_spec(shape):
    """BlockSpec for a broadcast (grid-invariant) operand."""
    zeros = (0,) * len(shape)
    return pl.BlockSpec(shape, lambda i, _z=zeros: _z)


def _layernorm(v, g, b):
    mu = jnp.mean(v, axis=-1, keepdims=True)
    var = jnp.mean(jnp.square(v - mu), axis=-1, keepdims=True)
    return (v - mu) * jax.lax.rsqrt(var + EPS) * g + b


# ----------------------------------------------------------------------------
# Patch embed (+ cls token + pos embed) kernel
# ----------------------------------------------------------------------------
def patch_embed_kernel(p_ref, w_ref, b_ref, cls_ref, pos_ref, o_ref, *, tb):
    # p_ref: (Tb, P, Kp) bf16   w_ref: (Kp, D) bf16   b/cls: (1, D) f32
    # pos_ref: (P+1, D) f32     o_ref: (Tb, P+1, D) bf16
    pos = pos_ref[...]
    cls_row = cls_ref[...] + pos[0:1, :]      # (1, D) f32
    pos_p = pos[1:, :]                        # (P, D) f32
    w = w_ref[...]
    bias = b_ref[...]
    for b in range(tb):
        tok = jnp.dot(p_ref[b], w, preferred_element_type=jnp.float32) + bias
        seq = jnp.concatenate([cls_row, tok + pos_p], axis=0)   # (P+1, D) f32
        o_ref[b] = seq.astype(o_ref.dtype)


def patch_embed(patches, w, b, cls_tok, pos, tb):
    BTN, P, Kp = patches.shape
    D = w.shape[1]
    n = P + 1
    kern = functools.partial(patch_embed_kernel, tb=tb)
    return pl.pallas_call(
        kern,
        out_shape=jax.ShapeDtypeStruct((BTN, n, D), jnp.bfloat16),
        grid=(BTN // tb,),
        in_specs=[
            pl.BlockSpec((tb, P, Kp), lambda i: (i, 0, 0)),
            _const_spec((Kp, D)),
            _const_spec((1, D)),
            _const_spec((1, D)),
            _const_spec((n, D)),
        ],
        out_specs=pl.BlockSpec((tb, n, D), lambda i: (i, 0, 0)),
        compiler_params=pltpu.CompilerParams(
            dimension_semantics=("parallel",),
            vmem_limit_bytes=VMEM_LIMIT,
        ),
    )(patches, w, b, cls_tok, pos)


# ----------------------------------------------------------------------------
# ViT block kernel (LN -> MHSA -> LN -> MLP, residuals)
# ----------------------------------------------------------------------------
def vit_block_kernel(
    x_ref,
    ln1g_ref, ln1b_ref,
    wqkv_ref, bqkv_ref,
    wproj_ref, bproj_ref,
    ln2g_ref, ln2b_ref,
    wfc1_ref, bfc1_ref,
    wfc2_ref, bfc2_ref,
    o_ref,
    *,
    num_heads, tb,
):
    n = x_ref.shape[1]
    D = x_ref.shape[2]
    hd = D // num_heads
    scale = float(hd) ** -0.5
    M = tb * n

    # Flatten (Tb, n, D) -> (M, D) f32 so the weight matmuls / LN see M rows.
    if tb == 1:
        x = x_ref[0].astype(jnp.float32)
    else:
        x = jnp.concatenate(
            [x_ref[b].astype(jnp.float32) for b in range(tb)], axis=0)

    # --- multi-head self-attention (per-head weight slabs, accumulating proj) ---
    h = _layernorm(x, ln1g_ref[...], ln1b_ref[...]).astype(jnp.bfloat16)  # (M, D)
    attn = jnp.zeros((M, D), jnp.float32)
    for hh in range(num_heads):
        q = (jnp.dot(h, wqkv_ref[0, hh], preferred_element_type=jnp.float32)
             + bqkv_ref[0, hh]) * scale
        k = jnp.dot(h, wqkv_ref[1, hh],
                    preferred_element_type=jnp.float32) + bqkv_ref[1, hh]
        v = jnp.dot(h, wqkv_ref[2, hh],
                    preferred_element_type=jnp.float32) + bqkv_ref[2, hh]
        ctx_parts = []
        for b in range(tb):
            qs = q[b * n:(b + 1) * n].astype(jnp.bfloat16)
            ks = k[b * n:(b + 1) * n].astype(jnp.bfloat16)
            vs = v[b * n:(b + 1) * n].astype(jnp.bfloat16)
            logits = jax.lax.dot_general(
                qs, ks, (((1,), (1,)), ((), ())),
                preferred_element_type=jnp.float32)            # (n, n) f32
            logits = logits - jnp.max(logits, axis=-1, keepdims=True)
            p = jnp.exp(logits)
            p = p * pl.reciprocal(jnp.sum(p, axis=-1, keepdims=True), approx=True)
            ctx_parts.append(jnp.dot(p.astype(jnp.bfloat16), vs,
                                     preferred_element_type=jnp.float32))
        ctx = ctx_parts[0] if tb == 1 else jnp.concatenate(ctx_parts, axis=0)
        attn = attn + jnp.dot(ctx.astype(jnp.bfloat16), wproj_ref[hh],
                              preferred_element_type=jnp.float32)
    x = x + attn + bproj_ref[...]

    # --- MLP ---
    h2 = _layernorm(x, ln2g_ref[...], ln2b_ref[...]).astype(jnp.bfloat16)
    m = jnp.dot(h2, wfc1_ref[...], preferred_element_type=jnp.float32) + bfc1_ref[...]
    # tanh GELU routes through the EUP; tiny numerics delta vs erf GELU.
    m = jax.nn.gelu(m, approximate=True).astype(jnp.bfloat16)
    m = jnp.dot(m, wfc2_ref[...], preferred_element_type=jnp.float32) + bfc2_ref[...]
    x = x + m

    for b in range(tb):
        o_ref[b] = x[b * n:(b + 1) * n].astype(o_ref.dtype)


def vit_block(tokens, blk, num_heads, tb):
    BTN, n, D = tokens.shape
    Hh = num_heads
    hd = D // Hh
    Dh = blk["wfc1"].shape[1]

    kern = functools.partial(vit_block_kernel, num_heads=num_heads, tb=tb)
    return pl.pallas_call(
        kern,
        out_shape=jax.ShapeDtypeStruct((BTN, n, D), jnp.bfloat16),
        grid=(BTN // tb,),
        in_specs=[
            pl.BlockSpec((tb, n, D), lambda i: (i, 0, 0)),
            _const_spec((1, D)), _const_spec((1, D)),
            _const_spec((3, Hh, D, hd)), _const_spec((3, Hh, 1, hd)),
            _const_spec((Hh, hd, D)), _const_spec((1, D)),
            _const_spec((1, D)), _const_spec((1, D)),
            _const_spec((D, Dh)), _const_spec((1, Dh)),
            _const_spec((Dh, D)), _const_spec((1, D)),
        ],
        out_specs=pl.BlockSpec((tb, n, D), lambda i: (i, 0, 0)),
        compiler_params=pltpu.CompilerParams(
            dimension_semantics=("parallel",),
            vmem_limit_bytes=VMEM_LIMIT,
        ),
    )(
        tokens,
        blk["ln1_g"], blk["ln1_b"],
        blk["wqkv"], blk["bqkv"],
        blk["wproj"], blk["bproj"],
        blk["ln2_g"], blk["ln2_b"],
        blk["wfc1"], blk["bfc1"],
        blk["wfc2"], blk["bfc2"],
    )


# ----------------------------------------------------------------------------
# Parameter setup (deterministic, synthetic) + kernel-layout preparation
# ----------------------------------------------------------------------------
def init_params(key, *, in_chans, patch, embed_dim, depth, num_heads, mlp_ratio,
                num_patches):
    Dh = int(embed_dim * mlp_ratio)
    keys = jax.random.split(key, 3 + depth)
    params = {
        # conv weight stored PyTorch-style (D, C, p, p)
        "patch_w": 0.02 * jax.random.normal(
            keys[0], (embed_dim, in_chans, patch, patch), jnp.float32),
        "patch_b": jnp.zeros((embed_dim,), jnp.float32),
        "cls_token": 0.02 * jax.random.normal(keys[1], (1, 1, embed_dim), jnp.float32),
        "pos_embed": 0.02 * jax.random.normal(
            keys[2], (1, num_patches + 1, embed_dim), jnp.float32),
        "blocks": [],
    }
    for d in range(depth):
        bk = jax.random.split(keys[3 + d], 4)
        params["blocks"].append({
            "ln1_g": jnp.ones((embed_dim,), jnp.float32),
            "ln1_b": jnp.zeros((embed_dim,), jnp.float32),
            # math layout: applied as x @ w
            "wqkv": 0.02 * jax.random.normal(bk[0], (embed_dim, 3 * embed_dim), jnp.float32),
            "bqkv": jnp.zeros((3 * embed_dim,), jnp.float32),
            "wproj": 0.02 * jax.random.normal(bk[1], (embed_dim, embed_dim), jnp.float32),
            "bproj": jnp.zeros((embed_dim,), jnp.float32),
            "ln2_g": jnp.ones((embed_dim,), jnp.float32),
            "ln2_b": jnp.zeros((embed_dim,), jnp.float32),
            "wfc1": 0.02 * jax.random.normal(bk[2], (embed_dim, Dh), jnp.float32),
            "bfc1": jnp.zeros((Dh,), jnp.float32),
            "wfc2": 0.02 * jax.random.normal(bk[3], (Dh, embed_dim), jnp.float32),
            "bfc2": jnp.zeros((embed_dim,), jnp.float32),
        })
    return params


def prepare_params(params, *, num_heads, patch, in_chans):
    """Model layout -> kernel layout: bf16 matmul weights, per-head qkv/proj
    slabs (timm (3, H, hd) column ordering), 2-D biases, 128-aligned
    patch-embed contraction dim."""
    D = params["patch_w"].shape[0]
    Hh = num_heads
    hd = D // Hh
    K = in_chans * patch * patch
    Kp = ((K + 127) // 128) * 128
    w_flat = params["patch_w"].reshape(D, K).T                      # (K, D)
    w_flat = jnp.pad(w_flat, ((0, Kp - K), (0, 0))).astype(jnp.bfloat16)
    prep = {
        "patch_w": w_flat,                                          # (Kp, D) bf16
        "patch_b": params["patch_b"].reshape(1, D),
        "cls_token": params["cls_token"].reshape(1, D),
        "pos_embed": params["pos_embed"][0],                        # (P+1, D) f32
        "k_pad": Kp,
        "blocks": [],
    }
    for blk in params["blocks"]:
        Dh = blk["wfc1"].shape[1]
        prep["blocks"].append({
            "ln1_g": blk["ln1_g"].reshape(1, D),
            "ln1_b": blk["ln1_b"].reshape(1, D),
            # (D, 3D) -> (3, H, D, hd): per-head q/k/v weight slabs
            "wqkv": blk["wqkv"].reshape(D, 3, Hh, hd)
                               .transpose(1, 2, 0, 3).astype(jnp.bfloat16),
            "bqkv": blk["bqkv"].reshape(3, Hh, 1, hd),
            # (D, D) -> (H, hd, D): per-head output-projection slabs
            "wproj": blk["wproj"].reshape(Hh, hd, D).astype(jnp.bfloat16),
            "bproj": blk["bproj"].reshape(1, D),
            "ln2_g": blk["ln2_g"].reshape(1, D),
            "ln2_b": blk["ln2_b"].reshape(1, D),
            "wfc1": blk["wfc1"].astype(jnp.bfloat16),
            "bfc1": blk["bfc1"].reshape(1, Dh),
            "wfc2": blk["wfc2"].astype(jnp.bfloat16),
            "bfc2": blk["bfc2"].reshape(1, D),
        })
    return prep


# ----------------------------------------------------------------------------
# ViTEncoder.forward equivalent
# ----------------------------------------------------------------------------
def vit_encoder_forward(params, x, *, patch, num_heads, n_levels, t_idx=None,
                        shared_time_embed=None):
    """
    x: (B, T, N, C, H, W)  ->  list of n_levels features, each (B, T, N, hw+1, d)
    """
    # TODO(synk): t_idx-conditioned bias sets (n_bias_sets / qkv_bitfit) and
    # shared_time_embed / time_attn are training-time adapters not modeled here.
    B, T, N, C, H, W = x.shape
    depth = len(params["blocks"])
    assert depth % n_levels == 0, "depth must be divisible by n_levels"
    feature_idxs = [lvl * (depth // n_levels) - 1 for lvl in range(1, n_levels + 1)]

    BTN = B * T * N
    gh, gw = H // patch, W // patch
    P = gh * gw
    D = params["patch_b"].shape[-1]
    Kp = params["k_pad"]
    K = C * patch * patch
    tb = _choose_tb(BTN)

    # rearrange 'B T N C H W -> (B T N) C H W' and unfold into conv patches,
    # element order (c, ki, kj) to match Conv2d weight flattening.
    xf = x.reshape(BTN, C, H, W)
    patches = (
        xf.reshape(BTN, C, gh, patch, gw, patch)
        .transpose(0, 2, 4, 1, 3, 5)
        .reshape(BTN, P, K)
    )
    patches = jnp.pad(patches, ((0, 0), (0, 0), (0, Kp - K))).astype(jnp.bfloat16)

    # fused patch-embed + cls-token + pos-embed -> bf16 tokens (BTN, P+1, D)
    tok = patch_embed(patches, params["patch_w"], params["patch_b"],
                      params["cls_token"], params["pos_embed"], tb)

    feats = []
    for i, blk in enumerate(params["blocks"]):
        tok = vit_block(tok, blk, num_heads, tb)
        if i in feature_idxs:
            # backbone.norm is Identity in ViTEncoder -> no final norm
            feats.append(tok.astype(jnp.float32))

    # rearrange '(B T N) n d -> B T N n d'
    return [f.reshape(B, T, N, P + 1, D) for f in feats]


# ----------------------------------------------------------------------------
if __name__ == "__main__":
    # small config consistent with the module's forward; D = 128 keeps the
    # token tensors lane-dense.
    B, T, N = 2, 2, 1
    C, H, W = 3, 32, 32
    patch = 8
    embed_dim = 128
    depth = 4
    num_heads = 4
    mlp_ratio = 4.0
    n_levels = 4
    num_patches = (H // patch) * (W // patch)

    key = jax.random.PRNGKey(0)
    pkey, xkey = jax.random.split(key)
    raw_params = init_params(
        pkey, in_chans=C, patch=patch, embed_dim=embed_dim, depth=depth,
        num_heads=num_heads, mlp_ratio=mlp_ratio, num_patches=num_patches)
    params = prepare_params(raw_params, num_heads=num_heads, patch=patch, in_chans=C)

    x = jax.random.normal(xkey, (B, T, N, C, H, W), jnp.float32)

    feats = vit_encoder_forward(
        params, x, patch=patch, num_heads=num_heads, n_levels=n_levels)
    feats = jax.block_until_ready(feats)

    assert len(feats) == n_levels
    for f in feats:
        assert f.shape == (B, T, N, num_patches + 1, embed_dim)
        assert bool(jnp.all(jnp.isfinite(f)))

    print("KERNEL_OK")
</pallas_src>

<mosaic_0001>
module attributes {stable_mosaic.version = 11 : i64} {
  func.func @patch_embed_kernel(%arg0: i32, %arg1: memref<4x16x256xbf16, #tpu.memory_space<vmem>>, %arg2: memref<256x128xbf16, #tpu.memory_space<vmem>>, %arg3: memref<1x128xf32, #tpu.memory_space<vmem>>, %arg4: memref<1x128xf32, #tpu.memory_space<vmem>>, %arg5: memref<17x128xf32, #tpu.memory_space<vmem>>, %arg6: memref<4x17x128xbf16, #tpu.memory_space<vmem>>) attributes {dimension_semantics = [#tpu.dimension_semantics<parallel>], iteration_bounds = array<i64: 1>, scalar_prefetch = 0 : i64, scratch_operands = 0 : i64, tpu.core_type = #tpu.core_type<tc>, window_params = [{transform_indices = @transform_0, window_bounds = array<i64: 4, 16, 256>}, {pipeline_mode = #tpu.pipeline_mode<synchronous>, transform_indices = @transform_1, window_bounds = array<i64: 256, 128>}, {pipeline_mode = #tpu.pipeline_mode<synchronous>, transform_indices = @transform_2, window_bounds = array<i64: 1, 128>}, {pipeline_mode = #tpu.pipeline_mode<synchronous>, transform_indices = @transform_3, window_bounds = array<i64: 1, 128>}, {pipeline_mode = #tpu.pipeline_mode<synchronous>, transform_indices = @transform_4, window_bounds = array<i64: 17, 128>}, {transform_indices = @transform_5, window_bounds = array<i64: 4, 17, 128>}]} {
    %c0 = arith.constant 0 : index
    %c0_0 = arith.constant 0 : index
    %0 = vector.load %arg5[%c0, %c0_0] : memref<17x128xf32, #tpu.memory_space<vmem>>, vector<17x128xf32>
    %c0_1 = arith.constant 0 : index
    %c0_2 = arith.constant 0 : index
    %1 = vector.load %arg4[%c0_1, %c0_2] : memref<1x128xf32, #tpu.memory_space<vmem>>, vector<1x128xf32>
    %2 = vector.extract_strided_slice %0 {offsets = [0, 0], sizes = [1, 128], strides = [1, 1]} : vector<17x128xf32> to vector<1x128xf32>
    %3 = arith.addf %1, %2 : vector<1x128xf32>
    %4 = vector.extract_strided_slice %0 {offsets = [1, 0], sizes = [16, 128], strides = [1, 1]} : vector<17x128xf32> to vector<16x128xf32>
    %c0_3 = arith.constant 0 : index
    %c0_4 = arith.constant 0 : index
    %5 = vector.load %arg2[%c0_3, %c0_4] : memref<256x128xbf16, #tpu.memory_space<vmem>>, vector<256x128xbf16>
    %c0_5 = arith.constant 0 : index
    %c0_6 = arith.constant 0 : index
    %6 = vector.load %arg3[%c0_5, %c0_6] : memref<1x128xf32, #tpu.memory_space<vmem>>, vector<1x128xf32>
    %c0_7 = arith.constant 0 : index
    %c0_8 = arith.constant 0 : index
    %c0_9 = arith.constant 0 : index
    %7 = vector.load %arg1[%c0_7, %c0_8, %c0_9] : memref<4x16x256xbf16, #tpu.memory_space<vmem>>, vector<1x16x256xbf16>
    %8 = vector.shape_cast %7 : vector<1x16x256xbf16> to vector<16x256xbf16>
    %cst = arith.constant dense<0.000000e+00> : vector<16x128xf32>
    %9 = tpu.matmul %8, %5, %cst {dimension_numbers = #tpu.dot_dimension_numbers<[1], [0], [0], [1], [0, 0, 1, 1], [], []>} : vector<16x256xbf16>, vector<256x128xbf16>, vector<16x128xf32> -> vector<16x128xf32>
    %10 = vector.broadcast %6 : vector<1x128xf32> to vector<16x128xf32>
    %11 = arith.addf %9, %10 : vector<16x128xf32>
    %12 = arith.addf %11, %4 : vector<16x128xf32>
    %13 = tpu.concatenate %3, %12 in 0 : vector<1x128xf32>, vector<16x128xf32> -> vector<17x128xf32>
    %14 = arith.truncf %13 : vector<17x128xf32> to vector<17x128xbf16>
    %c0_10 = arith.constant 0 : index
    %c0_11 = arith.constant 0 : index
    %c0_12 = arith.constant 0 : index
    %15 = vector.load %arg6[%c0_10, %c0_11, %c0_12] : memref<4x17x128xbf16, #tpu.memory_space<vmem>>, vector<1x17x128xbf16>
    %16 = vector.shape_cast %15 : vector<1x17x128xbf16> to vector<17x128xbf16>
    %17 = vector.shape_cast %14 : vector<17x128xbf16> to vector<1x17x128xbf16>
    tpu.vector_store %arg6[%c0_10, %c0_11, %c0_12], %17 {strides = array<i32>} : memref<4x17x128xbf16, #tpu.memory_space<vmem>>, vector<1x17x128xbf16>,
    %c1 = arith.constant 1 : index
    %c0_13 = arith.constant 0 : index
    %c0_14 = arith.constant 0 : index
    %18 = vector.load %arg1[%c1, %c0_13, %c0_14] : memref<4x16x256xbf16, #tpu.memory_space<vmem>>, vector<1x16x256xbf16>
    %19 = vector.shape_cast %18 : vector<1x16x256xbf16> to vector<16x256xbf16>
    %cst_15 = arith.constant dense<0.000000e+00> : vector<16x128xf32>
    %20 = tpu.matmul %19, %5, %cst_15 {dimension_numbers = #tpu.dot_dimension_numbers<[1], [0], [0], [1], [0, 0, 1, 1], [], []>} : vector<16x256xbf16>, vector<256x128xbf16>, vector<16x128xf32> -> vector<16x128xf32>
    %21 = vector.broadcast %6 : vector<1x128xf32> to vector<16x128xf32>
    %22 = arith.addf %20, %21 : vector<16x128xf32>
    %23 = arith.addf %22, %4 : vector<16x128xf32>
    %24 = tpu.concatenate %3, %23 in 0 : vector<1x128xf32>, vector<16x128xf32> -> vector<17x128xf32>
    %25 = arith.truncf %24 : vector<17x128xf32> to vector<17x128xbf16>
    %c1_16 = arith.constant 1 : index
    %c0_17 = arith.constant 0 : index
    %c0_18 = arith.constant 0 : index
    %26 = vector.load %arg6[%c1_16, %c0_17, %c0_18] : memref<4x17x128xbf16, #tpu.memory_space<vmem>>, vector<1x17x128xbf16>
    %27 = vector.shape_cast %26 : vector<1x17x128xbf16> to vector<17x128xbf16>
    %28 = vector.shape_cast %25 : vector<17x128xbf16> to vector<1x17x128xbf16>
    tpu.vector_store %arg6[%c1_16, %c0_17, %c0_18], %28 {strides = array<i32>} : memref<4x17x128xbf16, #tpu.memory_space<vmem>>, vector<1x17x128xbf16>,
    %c2 = arith.constant 2 : index
    %c0_19 = arith.constant 0 : index
    %c0_20 = arith.constant 0 : index
    %29 = vector.load %arg1[%c2, %c0_19, %c0_20] : memref<4x16x256xbf16, #tpu.memory_space<vmem>>, vector<1x16x256xbf16>
    %30 = vector.shape_cast %29 : vector<1x16x256xbf16> to vector<16x256xbf16>
    %cst_21 = arith.constant dense<0.000000e+00> : vector<16x128xf32>
    %31 = tpu.matmul %30, %5, %cst_21 {dimension_numbers = #tpu.dot_dimension_numbers<[1], [0], [0], [1], [0, 0, 1, 1], [], []>} : vector<16x256xbf16>, vector<256x128xbf16>, vector<16x128xf32> -> vector<16x128xf32>
    %32 = vector.broadcast %6 : vector<1x128xf32> to vector<16x128xf32>
    %33 = arith.addf %31, %32 : vector<16x128xf32>
    %34 = arith.addf %33, %4 : vector<16x128xf32>
    %35 = tpu.concatenate %3, %34 in 0 : vector<1x128xf32>, vector<16x128xf32> -> vector<17x128xf32>
    %36 = arith.truncf %35 : vector<17x128xf32> to vector<17x128xbf16>
    %c2_22 = arith.constant 2 : index
    %c0_23 = arith.constant 0 : index
    %c0_24 = arith.constant 0 : index
    %37 = vector.load %arg6[%c2_22, %c0_23, %c0_24] : memref<4x17x128xbf16, #tpu.memory_space<vmem>>, vector<1x17x128xbf16>
    %38 = vector.shape_cast %37 : vector<1x17x128xbf16> to vector<17x128xbf16>
    %39 = vector.shape_cast %36 : vector<17x128xbf16> to vector<1x17x128xbf16>
    tpu.vector_store %arg6[%c2_22, %c0_23, %c0_24], %39 {strides = array<i32>} : memref<4x17x128xbf16, #tpu.memory_space<vmem>>, vector<1x17x128xbf16>,
    %c3 = arith.constant 3 : index
    %c0_25 = arith.constant 0 : index
    %c0_26 = arith.constant 0 : index
    %40 = vector.load %arg1[%c3, %c0_25, %c0_26] : memref<4x16x256xbf16, #tpu.memory_space<vmem>>, vector<1x16x256xbf16>
    %41 = vector.shape_cast %40 : vector<1x16x256xbf16> to vector<16x256xbf16>
    %cst_27 = arith.constant dense<0.000000e+00> : vector<16x128xf32>
    %42 = tpu.matmul %41, %5, %cst_27 {dimension_numbers = #tpu.dot_dimension_numbers<[1], [0], [0], [1], [0, 0, 1, 1], [], []>} : vector<16x256xbf16>, vector<256x128xbf16>, vector<16x128xf32> -> vector<16x128xf32>
    %43 = vector.broadcast %6 : vector<1x128xf32> to vector<16x128xf32>
    %44 = arith.addf %42, %43 : vector<16x128xf32>
    %45 = arith.addf %44, %4 : vector<16x128xf32>
    %46 = tpu.concatenate %3, %45 in 0 : vector<1x128xf32>, vector<16x128xf32> -> vector<17x128xf32>
    %47 = arith.truncf %46 : vector<17x128xf32> to vector<17x128xbf16>
    %c3_28 = arith.constant 3 : index
    %c0_29 = arith.constant 0 : index
    %c0_30 = arith.constant 0 : index
    %48 = vector.load %arg6[%c3_28, %c0_29, %c0_30] : memref<4x17x128xbf16, #tpu.memory_space<vmem>>, vector<1x17x128xbf16>
    %49 = vector.shape_cast %48 : vector<1x17x128xbf16> to vector<17x128xbf16>
    %50 = vector.shape_cast %47 : vector<17x128xbf16> to vector<1x17x128xbf16>
    tpu.vector_store %arg6[%c3_28, %c0_29, %c0_30], %50 {strides = array<i32>} : memref<4x17x128xbf16, #tpu.memory_space<vmem>>, vector<1x17x128xbf16>,
    return
  }
  func.func @transform_0(%arg0: i32) -> (i32, i32, i32) {
    %c0_i32 = arith.constant 0 : i32
    %c0_i32_0 = arith.constant 0 : i32
    %c0_i32_1 = arith.constant 0 : i32
    return %arg0, %c0_i32, %c0_i32_0 : i32, i32, i32
  }
  func.func @transform_1(%arg0: i32) -> (i32, i32) {
    %c0_i32 = arith.constant 0 : i32
    %c0_i32_0 = arith.constant 0 : i32
    %c0_i32_1 = arith.constant 0 : i32
    return %c0_i32, %c0_i32_0 : i32, i32
  }
  func.func @transform_2(%arg0: i32) -> (i32, i32) {
    %c0_i32 = arith.constant 0 : i32
    %c0_i32_0 = arith.constant 0 : i32
    %c0_i32_1 = arith.constant 0 : i32
    return %c0_i32, %c0_i32_0 : i32, i32
  }
  func.func @transform_3(%arg0: i32) -> (i32, i32) {
    %c0_i32 = arith.constant 0 : i32
    %c0_i32_0 = arith.constant 0 : i32
    %c0_i32_1 = arith.constant 0 : i32
    return %c0_i32, %c0_i32_0 : i32, i32
  }
  func.func @transform_4(%arg0: i32) -> (i32, i32) {
    %c0_i32 = arith.constant 0 : i32
    %c0_i32_0 = arith.constant 0 : i32
    %c0_i32_1 = arith.constant 0 : i32
    return %c0_i32, %c0_i32_0 : i32, i32
  }
  func.func @transform_5(%arg0: i32) -> (i32, i32, i32) {
    %c0_i32 = arith.constant 0 : i32
    %c0_i32_0 = arith.constant 0 : i32
    %c0_i32_1 = arith.constant 0 : i32
    return %arg0, %c0_i32, %c0_i32_0 : i32, i32, i32
  }
}

</mosaic_0001>

<bundles_post_ra>
// kernel: tpu_custom_call.1
= control target key start
LH: loop header
LB: loop body
LE: loop exit
PB: predicated region body
PF: predicated region fallthrough
CT: control target
= control target key end

     0   :  { %10 = vsyncpa [#allocation3], 0  ;;  %s863_s0 = inlined_call_operand.hbm [shape: bf16[4,16,256], index: 0, kind: input, shape index: {}]   ;;  %s864_s1 = inlined_call_operand.hbm [shape: bf16[256,128], index: 1, kind: input, shape index: {}]   ;;  %s865_s2 = inlined_call_operand.vmem [shape: f32[1,128], index: 2, kind: input, shape index: {}]   ;;  %s866_s3 = inlined_call_operand.vmem [shape: f32[1,128], index: 3, kind: input, shape index: {}]   ;;  %s867_s4 = inlined_call_operand.hbm [shape: f32[17,128], index: 4, kind: input, shape index: {}]   ;;  %s868_s5 = inlined_call_operand.vmem [shape: bf16[4,17,128], index: 5, kind: output, shape index: {}]  }
   0x1   :  { %11 = vsyncpa [#allocation5], 0  ;;  %s29_s20 = sshll.u32 %s864_s1, 4  ;;  %s694_s21 = smov [#allocation4]   ;;  %s30_s20 = int_to_ptr.hbm [resolvable:$true] %s29_s20 }
   0x2   :  { %s31_s22 = sshll.u32 %s694_s21, 4  ;;  %s16_s25 = sshll.u32 %s863_s0, 4  ;;  %s32_s22 = int_to_ptr.vmem [resolvable:$true] %s31_s22  ;;  %s17_s25 = int_to_ptr.hbm [resolvable:$true] %s16_s25 }
   0x3   :  { %s695_s26 = smov 64   ;;  %s696_s27 = smov 4  }
   0x4   :  { %37 = dma.hbm_to_vmem [thread:$0]  %s30_s20, 2048, %s32_s22, [#allocation5], %s695_s26, %s695_s26, %s696_s27  }
   0x5   :  { %s697_s28 = smov [#allocation2]   ;;  %s698_s30 = smov 128  }
   0x6   :  { %s18_s29 = sshll.u32 %s697_s28, 4  ;;  %s699_s6 = smov 8   ;;  %s19_s29 = int_to_ptr.vmem [resolvable:$true] %s18_s29 }
   0x7   :  { %24 = dma.hbm_to_vmem [thread:$0]  %s17_s25, 1024, %s19_s29, [#allocation3], %s698_s30, %s698_s30, %s699_s6  }
   0x8   :  { %s46_s8 = sshll.u32 %s867_s4, 4  ;;  %s700_s9 = smov [#allocation6]   ;;  %s47_s8 = int_to_ptr.hbm [resolvable:$true] %s46_s8 }
   0x9   :  { %s48_s10 = sshll.u32 %s700_s9, 4  ;;  %s49_s10 = int_to_ptr.vmem [resolvable:$true] %s48_s10 }
   0xa   :  { %54 = dma.hbm_to_vmem [thread:$0]  %s47_s8, 384, %s49_s10, [#allocation5], %s698_s30, %s698_s30, %s699_s6  }
   0xb   :  { %690 = dma.done.wait [#allocation3], 1024  }
   0xc   :  { %691 = vsyncadd [#allocation3], 4294966272 }
   0xd   :  { %692 = dma.done.wait [#allocation5], 2432  }
   0xe   :  { %693 = vsyncadd [#allocation5], 4294964864  ;;  %v582_v0 = vld [vmem:[#allocation4 + $0x38] sm:$0xff]  ;;  %v740_v2 = vld [vmem:[#allocation4 + $0x30] sm:$0xff]  ;;  %vm247_vm0 = vcmask 1046528   ;;  %vm259_vm1 = vcmask 1040384  }
   0xf   :  { %v590_v1 = vld [vmem:[#allocation4 + $0x78] sm:$0xff]  ;;  %216 = vmatpush.bf16.msra.mxu0 %v582_v0  ;;  %v742_v3 = vld [vmem:[#allocation4 + $0x70] sm:$0xff]  ;;  %291 = vmatpush.bf16.msra.mxu2 %v582_v0  ;;  %v746_v4 = vld [vmem:[#allocation4 + $0x28] sm:$0xff]  ;;  %vm273_vm2 = vsmask.f32 256 }
  0x10   :  { %230 = vmatpush.bf16.msra.mxu1 %v590_v1  ;;  %305 = vmatpush.bf16.msra.mxu3 %v590_v1  ;;  %v748_v5 = vld [vmem:[#allocation4 + $0x68] sm:$0xff]  ;;  %v579_v6 = vld [vmem:[#allocation4 + $0x20] sm:$0xff]  ;;  %v578_v8 = vld [vmem:[#allocation4 + $0x18] sm:$0xff] }
  0x11   :  { %v587_v7 = vld [vmem:[#allocation4 + $0x60] sm:$0xff]  ;;  %v586_v9 = vld [vmem:[#allocation4 + $0x58] sm:$0xff]  ;;  %v577_v10 = vld [vmem:[#allocation4 + $0x10] sm:$0xff] }
  0x12   :  { %v585_v11 = vld [vmem:[#allocation4 + $0x50] sm:$0xff]  ;;  %v576_v12 = vld [vmem:[#allocation4 + $0x8] sm:$0xff]  ;;  %v756_v14 = vld [vmem:[#allocation4] sm:$0xff] }
  0x13   :  { %217 = vmatpush.bf16.msra.mxu0 %v740_v2  ;;  %292 = vmatpush.bf16.msra.mxu2 %v740_v2  ;;  %v584_v13 = vld [vmem:[#allocation4 + $0x48] sm:$0xff]  ;;  %v758_v15 = vld [vmem:[#allocation4 + $0x40] sm:$0xff]  ;;  %v541_v16 = vld [vmem:[#allocation2 + $0x10] sm:$0xf] }
  0x14   :  { %231 = vmatpush.bf16.msra.mxu1 %v742_v3  ;;  %306 = vmatpush.bf16.msra.mxu3 %v742_v3  ;;  %v594_v17 = vld [vmem:[#allocation2 + $0x14] sm:$0xf0]  ;;  %v593_v18 = vld [vmem:[#allocation2 + $0x14] sm:$0xf]  ;;  %v543_v19 = vld [vmem:[#allocation2 + $0x18] sm:$0xf0] }
  0x15   :  { %v469_v20 = vld [vmem:[#allocation2] sm:$0xf]  ;;  %v592_v21 = vld [vmem:[#allocation2 + $0x4] sm:$0xf0]  ;;  %v591_v22 = vld [vmem:[#allocation2 + $0x4] sm:$0xf]  ;;  %v542_v24 = vor.u32 %v594_v17, %v541_v16  ;;  %v546_v25 = vor.u32 %v593_v18, %v543_v19 }
  0x16   :  { %v471_v23 = vld [vmem:[#allocation2 + $0x8] sm:$0xf0]  ;;  %v470_v26 = vor.u32 %v592_v21, %v469_v20  ;;  %v553_v28 = vld [vmem:[#allocation2 + $0x20] sm:$0xf]  ;;  %v596_v29 = vld [vmem:[#allocation2 + $0x24] sm:$0xf0] }
  0x17   :  { %218 = vmatpush.bf16.msra.mxu0 %v746_v4  ;;  %293 = vmatpush.bf16.msra.mxu2 %v746_v4  ;;  %v474_v27 = vor.u32 %v591_v22, %v471_v23  ;;  %v595_v30 = vld [vmem:[#allocation2 + $0x24] sm:$0xf]  ;;  %v555_v31 = vld [vmem:[#allocation2 + $0x28] sm:$0xf0]  ;;  %v565_v32 = vld [vmem:[#allocation2 + $0x30] sm:$0xf]  ;;  %v554_v36 = vor.u32 %v596_v29, %v553_v28 }
  0x18   :  { %232 = vmatpush.bf16.msra.mxu1 %v748_v5  ;;  %307 = vmatpush.bf16.msra.mxu3 %v748_v5  ;;  %v598_v33 = vld [vmem:[#allocation2 + $0x34] sm:$0xf0]  ;;  %v597_v34 = vld [vmem:[#allocation2 + $0x34] sm:$0xf]  ;;  %v567_v35 = vld [vmem:[#allocation2 + $0x38] sm:$0xf0]  ;;  %v558_v37 = vor.u32 %v595_v30, %v555_v31 }
  0x19   :  { %v566_v38 = vor.u32 %v598_v33, %v565_v32  ;;  %v570_v39 = vor.u32 %v597_v34, %v567_v35  ;;  %v779_v40 = vld [vmem:[%s865_s2] ss:$0 sm:$0xff]  ;;  %v68_v42 = vld [vmem:[#allocation6 + $0x8] sm:$0xff]  ;;  %v69_v49 = vld [vmem:[#allocation6 + $0x10] sm:$0x1] }
  0x1a   :  { %v67_v41 = vld [vmem:[#allocation6] sm:$0xff]  ;;  %v249_v46 = vrot.slane %v68_v42, 1  ;;  %v251_v54 = vrot.slane %v69_v49, 1  ;;  %vm796_vm3 = vmand %vm259_vm1, %vm273_vm2  ;;  %v549_v20 = vld [vmem:[%s868_s5 + $0x14] sm:$0x1] }
  0x1b   :  { %219 = vmatpush.bf16.msra.mxu0 %v579_v6  ;;  %294 = vmatpush.bf16.msra.mxu2 %v579_v6  ;;  %v248_v45 = vrot.slane %v67_v41, 1  ;;  %v70_v55 = vld [vmem:[%s866_s3] sm:$0x1] }
  0x1c   :  { %233 = vmatpush.bf16.msra.mxu1 %v587_v7  ;;  %308 = vmatpush.bf16.msra.mxu3 %v587_v7  ;;  %v71_v61 = vadd.f32 %v70_v55, %v67_v41  ;;  %v789_v63 = vsel %vm247_vm0, %v249_v46, %v251_v54 }
  0x1d   :  { %v250_v50 = vsel %vm247_vm0, %v248_v45, %v249_v46  ;;  %v561_v46 = vld [vmem:[%s868_s5 + $0x20] sm:$0x1] }
  0x1f   :  { %220 = vmatpush.bf16.msra.mxu0 %v578_v8  ;;  %295 = vmatpush.bf16.msra.mxu2 %v578_v8 }
  0x20   :  { %234 = vmatpush.bf16.msra.mxu1 %v586_v9  ;;  %309 = vmatpush.bf16.msra.mxu3 %v586_v9 }
  0x23   :  { %221 = vmatpush.bf16.msra.mxu0 %v577_v10  ;;  %296 = vmatpush.bf16.msra.mxu2 %v577_v10 }
  0x24   :  { %235 = vmatpush.bf16.msra.mxu1 %v585_v11  ;;  %310 = vmatpush.bf16.msra.mxu3 %v585_v11 }
  0x27   :  { %222 = vmatpush.bf16.msra.mxu0 %v576_v12  ;;  %297 = vmatpush.bf16.msra.mxu2 %v576_v12 }
  0x28   :  { %236 = vmatpush.bf16.msra.mxu1 %v584_v13  ;;  %311 = vmatpush.bf16.msra.mxu3 %v584_v13 }
  0x2b   :  { %223 = vmatpush.bf16.msra.mxu0 %v756_v14  ;;  %298 = vmatpush.bf16.msra.mxu2 %v756_v14 }
  0x2c   :  { %237 = vmatpush.bf16.msra.mxu1 %v758_v15  ;;  %312 = vmatpush.bf16.msra.mxu3 %v758_v15 }
  0x2e   :  { %299 = vmatmul.bf16.vlgmr.msra.gmra.mxu2 %v542_v24  ;;  %224 = vmatmul.bf16.vlgmr.msra.gmra.mxu0 %v470_v26 }
  0x2f   :  { %352 = vmatpush.bf16.msrb.mxu0 %v582_v0  ;;  %413 = vmatpush.bf16.msrb.mxu2 %v582_v0 }
  0x30   :  { %366 = vmatpush.bf16.msrb.mxu1 %v590_v1  ;;  %427 = vmatpush.bf16.msrb.mxu3 %v590_v1 }
  0x31   :  { %313 = vmatmul.bf16.vlgmr.msra.gmra.mxu3 %v546_v25  ;;  %238 = vmatmul.bf16.vlgmr.msra.gmra.mxu1 %v474_v27 }
  0x33   :  { %353 = vmatpush.bf16.msrb.mxu0 %v740_v2  ;;  %414 = vmatpush.bf16.msrb.mxu2 %v740_v2 }
  0x34   :  { %367 = vmatpush.bf16.msrb.mxu1 %v742_v3  ;;  %428 = vmatpush.bf16.msrb.mxu3 %v742_v3 }
  0x37   :  { %354 = vmatpush.bf16.msrb.mxu0 %v746_v4  ;;  %415 = vmatpush.bf16.msrb.mxu2 %v746_v4 }
  0x38   :  { %368 = vmatpush.bf16.msrb.mxu1 %v748_v5  ;;  %429 = vmatpush.bf16.msrb.mxu3 %v748_v5 }
  0x3b   :  { %355 = vmatpush.bf16.msrb.mxu0 %v579_v6  ;;  %416 = vmatpush.bf16.msrb.mxu2 %v579_v6 }
  0x3c   :  { %369 = vmatpush.bf16.msrb.mxu1 %v587_v7  ;;  %430 = vmatpush.bf16.msrb.mxu3 %v587_v7 }
  0x3f   :  { %356 = vmatpush.bf16.msrb.mxu0 %v578_v8  ;;  %417 = vmatpush.bf16.msrb.mxu2 %v578_v8 }
  0x40   :  { %370 = vmatpush.bf16.msrb.mxu1 %v586_v9  ;;  %431 = vmatpush.bf16.msrb.mxu3 %v586_v9 }
  0x43   :  { %357 = vmatpush.bf16.msrb.mxu0 %v577_v10  ;;  %418 = vmatpush.bf16.msrb.mxu2 %v577_v10 }
  0x44   :  { %371 = vmatpush.bf16.msrb.mxu1 %v585_v11  ;;  %432 = vmatpush.bf16.msrb.mxu3 %v585_v11 }
  0x47   :  { %358 = vmatpush.bf16.msrb.mxu0 %v576_v12  ;;  %419 = vmatpush.bf16.msrb.mxu2 %v576_v12  ;;  %v275_v12 = vld [vmem:[%s868_s5 + $0x8] sm:$0x1] }
  0x48   :  { %372 = vmatpush.bf16.msrb.mxu1 %v584_v13  ;;  %433 = vmatpush.bf16.msrb.mxu3 %v584_v13 }
  0x4b   :  { %359 = vmatpush.bf16.msrb.mxu0 %v756_v14  ;;  %420 = vmatpush.bf16.msrb.mxu2 %v756_v14 }
  0x4c   :  { %373 = vmatpush.bf16.msrb.mxu1 %v758_v15  ;;  %434 = vmatpush.bf16.msrb.mxu3 %v758_v15 }
  0x4e   :  { %360 = vmatmul.bf16.vlgmr.msrb.gmra.mxu0 %v554_v36  ;;  %421 = vmatmul.bf16.vlgmr.msrb.gmra.mxu2 %v566_v38 }
  0x4f   :  { %374 = vmatmul.bf16.vlgmr.msrb.gmra.mxu1 %v558_v37  ;;  %435 = vmatmul.bf16.vlgmr.msrb.gmra.mxu3 %v570_v39 }
  0xab   :  { %v225_v43 = vpop.f32.mrf.mxu0 }
  0xac   :  { %v226_v47 = vadd.f32 %v779_v40, %v225_v43 }
  0xae   :  { %v239_v44 = vpop.f32.mrf.mxu1 }
  0xaf   :  { %v240_v48 = vadd.f32 %v239_v44, %v226_v47 }
  0xb1   :  { %v300_v51 = vpop.f32.mrf.mxu2  ;;  %v255_v56 = vadd.f32 %v250_v50, %v240_v48 }
  0xb2   :  { %v301_v53 = vadd.f32 %v779_v40, %v300_v51 }
  0xb3   :  { %v227_v58 = vpop.f32.mrf.mxu0  ;;  %v260_v0 = vrot.slane %v255_v56, 7 }
  0xb4   :  { %v314_v52 = vpop.f32.mrf.mxu3  ;;  %v228_v60 = vadd.f32 %v779_v40, %v227_v58 }
  0xb5   :  { %v315_v57 = vadd.f32 %v314_v52, %v301_v53  ;;  %v266_v8 = vsel %vm259_vm1, %v71_v61, %v260_v0 }
  0xb6   :  { %v241_v59 = vpop.f32.mrf.mxu1 }
  0xb7   :  { %v319_v62 = vadd.f32 %v315_v57, %v250_v50  ;;  %v242_v1 = vadd.f32 %v241_v59, %v228_v60  ;;  %v573_v57 = vld [vmem:[%s868_s5 + $0x2c] sm:$0x1] }
  0xb9   :  { %v323_v2 = vrot.slane %v319_v62, 7  ;;  %v302_v3 = vpop.f32.mrf.mxu2  ;;  %v256_v4 = vadd.f32 %v789_v63, %v242_v1 }
  0xba   :  { %v303_v7 = vadd.f32 %v779_v40, %v302_v3 }
  0xbb   :  { %v329_v6 = vsel %vm259_vm1, %v71_v61, %v323_v2  ;;  %v261_v10 = vrot.slane %v256_v4, 7 }
  0xbc   :  { %v316_v5 = vpop.f32.mrf.mxu3  ;;  %v330_v9 = vpack.c.bf16 %v329_v6, %v329_v6 }
  0xbd   :  { %v317_v13 = vadd.f32 %v316_v5, %v303_v7  ;;  %v262_v14 = vsel %vm259_vm1, %v260_v0, %v261_v10  ;;  %v269_v15 = vpack.c.bf16 %v261_v10, %v261_v10 }
  0xbe   :  { %547 = vst [vmem:[%s868_s5 + $0xc] sm:$0xf] %v330_v9  ;;  %v602_v16 = vpack.c.bf16 %v262_v14, %v266_v8 }
  0xbf   :  { %v320_v17 = vadd.f32 %v317_v13, %v789_v63  ;;  %v276_v18 = vsel %vm796_vm3, %v269_v15, %v275_v12 }
  0xc0   :  { %603 = vst [vmem:[%s868_s5] sm:$0xff] %v602_v16  }
  0xc1   :  { %v324_v19 = vrot.slane %v320_v17, 7  ;;  %277 = vst [vmem:[%s868_s5 + $0x8] sm:$0x1] %v276_v18 }
  0xc3   :  { %v325_v21 = vsel %vm259_vm1, %v323_v2, %v324_v19  ;;  %v332_v22 = vpack.c.bf16 %v324_v19, %v324_v19 }
  0xc4   :  { %v331_v23 = vpack.c.bf16 %v325_v21, %v325_v21 }
  0xc5   :  { %v337_v24 = vsel %vm796_vm3, %v332_v22, %v549_v20 }
  0xc6   :  { %548 = vst [vmem:[%s868_s5 + $0x10] sm:$0xf] %v331_v23 }
  0xc7   :  { %550 = vst [vmem:[%s868_s5 + $0x14] sm:$0x1] %v337_v24 }
  0xcb   :  { %v361_v25 = vpop.f32.mrf.mxu0 }
  0xcc   :  { %v375_v26 = vpop.f32.mrf.mxu1  ;;  %v362_v27 = vadd.f32 %v779_v40, %v361_v25 }
  0xce   :  { %v376_v28 = vadd.f32 %v375_v26, %v362_v27 }
  0xd0   :  { %v380_v33 = vadd.f32 %v376_v28, %v250_v50 }
  0xd1   :  { %v422_v29 = vpop.f32.mrf.mxu2 }
  0xd2   :  { %v436_v30 = vpop.f32.mrf.mxu3  ;;  %v423_v31 = vadd.f32 %v779_v40, %v422_v29  ;;  %v384_v39 = vrot.slane %v380_v33, 7 }
  0xd3   :  { %v363_v32 = vpop.f32.mrf.mxu0 }
  0xd4   :  { %v364_v34 = vadd.f32 %v779_v40, %v363_v32  ;;  %v437_v35 = vadd.f32 %v436_v30, %v423_v31  ;;  %v377_v36 = vpop.f32.mrf.mxu1  ;;  %v390_v48 = vsel %vm259_vm1, %v71_v61, %v384_v39 }
  0xd6   :  { %v378_v37 = vadd.f32 %v377_v36, %v364_v34  ;;  %v441_v38 = vadd.f32 %v437_v35, %v250_v50 }
  0xd8   :  { %v381_v41 = vadd.f32 %v378_v37, %v789_v63  ;;  %v445_v42 = vrot.slane %v441_v38, 7 }
  0xd9   :  { %v424_v44 = vpop.f32.mrf.mxu2 }
  0xda   :  { %v385_v43 = vrot.slane %v381_v41, 7  ;;  %v451_v45 = vsel %vm259_vm1, %v71_v61, %v445_v42  ;;  %v425_v47 = vadd.f32 %v779_v40, %v424_v44  ;;  %v438_v52 = vpop.f32.mrf.mxu3 }
  0xdb   :  { %v452_v49 = vpack.c.bf16 %v451_v45, %v451_v45 }
  0xdc   :  { %v386_v51 = vsel %vm259_vm1, %v384_v39, %v385_v43  ;;  %v393_v50 = vpack.c.bf16 %v385_v43, %v385_v43  ;;  %v439_v54 = vadd.f32 %v438_v52, %v425_v47 }
  0xdd   :  { %v607_v53 = vpack.c.bf16 %v386_v51, %v390_v48  ;;  %571 = vst [vmem:[%s868_s5 + $0x24] sm:$0xf] %v452_v49 }
  0xde   :  { %v398_v55 = vsel %vm796_vm3, %v393_v50, %v561_v46  ;;  %v442_v40 = vadd.f32 %v439_v54, %v789_v63 }
  0xdf   :  { %609 = vst [vmem:[%s868_s5 + $0x18] sm:$0xff] %v607_v53  }
  0xe0   :  { %562 = vst [vmem:[%s868_s5 + $0x20] sm:$0x1] %v398_v55  ;;  %v446_v56 = vrot.slane %v442_v40, 7 }
  0xe2   :  { %v447_v58 = vsel %vm259_vm1, %v445_v42, %v446_v56  ;;  %v454_v59 = vpack.c.bf16 %v446_v56, %v446_v56 }
  0xe3   :  { %v453_v60 = vpack.c.bf16 %v447_v58, %v447_v58 }
  0xe4   :  { %v459_v61 = vsel %vm796_vm3, %v454_v59, %v573_v57 }
  0xe5   :  { %572 = vst [vmem:[%s868_s5 + $0x28] sm:$0xf] %v453_v60 }
  0xe6   :  { %574 = vst [vmem:[%s868_s5 + $0x2c] sm:$0x1] %v459_v61 }
  0xe7   :  { %465 = vsyncpa [#allocation3], 1 }
  0xe8   :  { %466 = vsyncpa [#allocation5], 1 }

</bundles_post_ra>
